<compile_context>
chip_gen: v5e
topology: v5e:2x2
jax: 0.10.0
libtpu: 0.0.40
codegen_flags: <defaults>
</compile_context>

<pallas_src>
import functools
import numpy as np
import jax
import jax.numpy as jnp
from jax.experimental import pallas as pl
from jax.experimental.pallas import tpu as pltpu

BN_EPS = 1e-5
ROW_ALIGN = 16      # sublane alignment for row tiles (bf16-friendly)
K_ALIGN = 16        # alignment for the im2col contraction dim
MAX_TILE_R = 512    # row-tile cap: keeps per-call VMEM well under v7x's 64 MiB


def _round_up(x, m):
    return ((x + m - 1) // m) * m


def _pad_cout(c):
    """Channel padding: dense MXU tiles for big Cout, no 128-lane blow-up for small."""
    if c >= 256:
        return _round_up(c, 256)
    if c >= 128:
        return _round_up(c, 128)
    return _round_up(c, 16)


def _pick_tile_r(r):
    """Row tile: cap at MAX_TILE_R, prefer >= 2 tiles (pipelining + v7x megacore)."""
    if r >= 2 * MAX_TILE_R:
        return MAX_TILE_R
    if r >= 2 * ROW_ALIGN:
        return _round_up((r + 1) // 2, ROW_ALIGN)
    return ROW_ALIGN


_CPARAMS = pltpu.CompilerParams(
    dimension_semantics=("parallel",),
    vmem_limit_bytes=32 * 1024 * 1024,
)


# --------------------------------------------------------------------------
# Pass 1 (the only per-layer pass): tiled im2col-GEMM (bf16 MXU, f32 acc)
# + per-tile BN partial sums.  y is stored in bf16.
# --------------------------------------------------------------------------
def _gemm_stats_kernel(p_ref, w_ref, y_ref, s_ref):
    """p_ref: (tile_r, Kp) bf16   w_ref: (Kp, Cp) bf16
       y_ref: (tile_r, Cp) bf16   s_ref: (8, Cp) f32 (row0=sum, row1=sumsq)."""
    y = jnp.dot(p_ref[...], w_ref[...], preferred_element_type=jnp.float32)
    # Train-mode BatchNorm partials in f32, accumulated BEFORE the bf16 store.
    # Padded (all-zero) patch rows contribute exactly 0 (no conv bias).
    csum = jnp.sum(y, axis=0, keepdims=True)          # (1, Cp)
    csumsq = jnp.sum(y * y, axis=0, keepdims=True)    # (1, Cp)
    row = jax.lax.broadcasted_iota(jnp.int32, s_ref.shape, 0)
    s_ref[...] = jnp.where(row == 0, csum, 0.0) + jnp.where(row == 1, csumsq, 0.0)
    y_ref[...] = y.astype(y_ref.dtype)


# --------------------------------------------------------------------------
# Final-layer only: fused scale/shift + ReLU (f32 output for parity).
# --------------------------------------------------------------------------
def _scale_shift_relu_kernel(y_ref, sc_ref, sh_ref, o_ref):
    """y_ref: (tile_r, Cp) bf16   sc/sh: (1, Cp) f32   o_ref: (tile_r, Cp) f32."""
    o_ref[...] = jnp.maximum(
        y_ref[...].astype(jnp.float32) * sc_ref[...] + sh_ref[...], 0.0
    ).astype(o_ref.dtype)


# --------------------------------------------------------------------------
# Glue: im2col patch gather (fused under jit with the producing elementwise).
# --------------------------------------------------------------------------
def _im2col(a, stride):
    """a: (N, H, W, C) bf16 (already-activated) input -> (R, 9*C) bf16 rows (n,ho,wo)."""
    n, h, w, c = a.shape
    k, pad = 3, 1
    ho = (h + 2 * pad - k) // stride + 1
    wo = (w + 2 * pad - k) // stride + 1
    ap = jnp.pad(a, ((0, 0), (pad, pad), (pad, pad), (0, 0)))
    cols = [ap[:, di:di + stride * ho:stride, dj:dj + stride * wo:stride, :]
            for di in range(k) for dj in range(k)]
    p = jnp.stack(cols, axis=3)                       # (N, Ho, Wo, 9, C)
    return p.reshape(n * ho * wo, k * k * c), (n, ho, wo)


# --------------------------------------------------------------------------
# One Conv2dBlock's heavy work: GEMM + BN stats, folded scale/shift.
# --------------------------------------------------------------------------
def conv_bn_stats_block(patches, w, gamma, beta):
    """patches: (R, Kdim) bf16; w: (Cout, Cin, 3, 3) f32 (PyTorch layout).
    Returns y (Rp, Cp) bf16 raw conv output, scale/shift (Cp,) f32, and tiling meta.
    Conv bias is omitted — exactly cancelled by the train-mode BN mean subtraction."""
    R, Kdim = patches.shape
    Cout = w.shape[0]
    Cp = _pad_cout(Cout)
    Kp = _round_up(Kdim, K_ALIGN)
    tile_r = _pick_tile_r(R)
    Rp = _round_up(R, tile_r)
    nt = Rp // tile_r

    p = jnp.pad(patches, ((0, Rp - R), (0, Kp - Kdim)))
    # (Cout, Cin, kh, kw) -> (kh, kw, Cin, Cout) -> (Kdim, Cout), padded, bf16.
    w2 = jnp.transpose(w, (2, 3, 1, 0)).reshape(Kdim, Cout)
    w2 = jnp.pad(w2, ((0, Kp - Kdim), (0, Cp - Cout))).astype(jnp.bfloat16)

    y, stats = pl.pallas_call(
        _gemm_stats_kernel,
        out_shape=(jax.ShapeDtypeStruct((Rp, Cp), jnp.bfloat16),
                   jax.ShapeDtypeStruct((nt * 8, Cp), jnp.float32)),
        grid_spec=pltpu.PrefetchScalarGridSpec(
            num_scalar_prefetch=0,
            grid=(nt,),
            in_specs=[pl.BlockSpec((tile_r, Kp), lambda i: (i, 0)),
                      pl.BlockSpec((Kp, Cp), lambda i: (0, 0))],
            out_specs=(pl.BlockSpec((tile_r, Cp), lambda i: (i, 0)),
                       pl.BlockSpec((8, Cp), lambda i: (i, 0)))),
        compiler_params=_CPARAMS,
    )(p, w2)

    # Tiny per-channel math (glue): reduce partials, fold BN into scale/shift.
    stats = stats.reshape(nt, 8, Cp)
    csum = jnp.sum(stats[:, 0, :], axis=0)
    csumsq = jnp.sum(stats[:, 1, :], axis=0)
    mean = csum / R
    var = jnp.maximum(csumsq / R - mean * mean, 0.0)
    gamma_p = jnp.pad(gamma.astype(jnp.float32), (0, Cp - Cout))
    beta_p = jnp.pad(beta.astype(jnp.float32), (0, Cp - Cout))
    scale = gamma_p * jax.lax.rsqrt(var + BN_EPS)
    shift = beta_p - mean * scale
    return y, scale, shift, Rp, Cp, tile_r, nt


def bn_relu_final(y, scale, shift, Rp, Cp, tile_r, nt):
    """Final layer's BN + ReLU as a small tiled pallas pass (f32 output path)."""
    return pl.pallas_call(
        _scale_shift_relu_kernel,
        out_shape=jax.ShapeDtypeStruct((Rp, Cp), jnp.float32),
        grid_spec=pltpu.PrefetchScalarGridSpec(
            num_scalar_prefetch=0,
            grid=(nt,),
            in_specs=[pl.BlockSpec((tile_r, Cp), lambda i: (i, 0)),
                      pl.BlockSpec((1, Cp), lambda i: (0, 0)),
                      pl.BlockSpec((1, Cp), lambda i: (0, 0))],
            out_specs=pl.BlockSpec((tile_r, Cp), lambda i: (i, 0))),
        compiler_params=_CPARAMS,
    )(y, scale.reshape(1, Cp), shift.reshape(1, Cp))


# --------------------------------------------------------------------------
# Module plumbing
# --------------------------------------------------------------------------
def make_channel_numbers(latent_dim, min_channels, max_channels, in_size,
                         in_channels, sigma=False):
    latent_dim = 2 * latent_dim if sigma else latent_dim
    n = int(np.log2(in_size))
    mids = np.minimum(min_channels * 2 ** np.arange(n).astype(int),
                      np.ones(n, dtype=int) * int(max_channels))
    return [int(in_channels)] + [int(c) for c in mids] + [int(latent_dim)]


def init_params(key, channel_numbers, k=3):
    """Deterministic kaiming-uniform-style init matching PyTorch Conv2d shapes."""
    params = []
    n_blocks = len(channel_numbers) - 1
    for i in range(n_blocks):
        cin, cout = channel_numbers[i], channel_numbers[i + 1]
        key, k1, k2 = jax.random.split(key, 3)
        bound = 1.0 / np.sqrt(cin * k * k)
        w = jax.random.uniform(k1, (cout, cin, k, k), jnp.float32, -bound, bound)
        # conv bias kept for parameter parity with nn.Conv2d(bias=True) but it is a
        # mathematical no-op under the train-mode BatchNorm that follows.
        b = jax.random.uniform(k2, (cout,), jnp.float32, -bound, bound)
        gamma = jnp.ones((cout,), jnp.float32)
        beta = jnp.zeros((cout,), jnp.float32)
        stride = 2 if i != n_blocks - 1 else 1   # last Conv2dBlock uses stride=1
        params.append((w, b, gamma, beta, stride))
    return params


@functools.partial(jax.jit, static_argnames=("strides",))
def vae_encoder_forward(x_nchw, weights, strides):
    # single NCHW -> NHWC transpose at the input, and back at the output.
    x = jnp.transpose(x_nchw, (0, 2, 3, 1))
    act = x.astype(jnp.bfloat16)     # layer-0 input (no BN/ReLU precedes it)
    n_layers = len(strides)

    y = scale = shift = None
    Rp = Cp = tile_r = nt = None
    spatial = None
    Cout = None
    for li, ((w, gamma, beta), stride) in enumerate(zip(weights, strides)):
        patches, spatial = _im2col(act, stride)           # bf16 gather (glue)
        R = patches.shape[0]
        Cout = w.shape[0]
        y, scale, shift, Rp, Cp, tile_r, nt = conv_bn_stats_block(
            patches, w, gamma, beta)
        if li < n_layers - 1:
            # BN + ReLU fused into the NEXT layer's im2col glue: the elementwise is
            # fused into the gather by XLA, so no separate pass-2 round trip.
            n, ho, wo = spatial
            act = jnp.maximum(
                y[:R, :Cout].astype(jnp.float32) * scale[:Cout] + shift[:Cout], 0.0
            ).astype(jnp.bfloat16).reshape(n, ho, wo, Cout)

    # final layer: BN + ReLU via the small tiled pallas pass (f32 output).
    out = bn_relu_final(y, scale, shift, Rp, Cp, tile_r, nt)
    n, ho, wo = spatial
    out = out[:n * ho * wo, :Cout].reshape(n, ho, wo, Cout)
    return jnp.transpose(out, (0, 3, 1, 2))


if __name__ == "__main__":
    # Small config consistent with the module:
    #   in_size=16, in_channels=4, min_channels=8, max_channels=32, latent_dim=8
    #   -> channels [4, 8, 16, 32, 32, 8], spatial 16 -> 8 -> 4 -> 2 -> 1 -> 1
    key = jax.random.PRNGKey(0)
    kx, kp = jax.random.split(key)

    batch, in_channels, in_size = 2, 4, 16
    latent_dim, min_channels, max_channels = 8, 8, 32

    x = jax.random.normal(kx, (batch, in_channels, in_size, in_size), jnp.float32)

    channel_numbers = make_channel_numbers(
        latent_dim, min_channels, max_channels, in_size, in_channels, sigma=False)
    params = init_params(kp, channel_numbers)

    weights = tuple((w, gamma, beta) for (w, b, gamma, beta, s) in params)
    strides = tuple(int(s) for (*_, s) in params)

    out = vae_encoder_forward(x, weights, strides=strides)
    out = jax.block_until_ready(out)

    expected_shape = (batch, latent_dim, 1, 1)
    assert out.shape == expected_shape, (out.shape, expected_shape)
    assert bool(jnp.all(jnp.isfinite(out)))
    print("KERNEL_OK")
</pallas_src>

<mosaic_0001>
module attributes {stable_mosaic.version = 11 : i64} {
  func.func @_gemm_stats_kernel(%arg0: i32, %arg1: memref<64x48xbf16, #tpu.memory_space<vmem>>, %arg2: memref<48x16xbf16, #tpu.memory_space<vmem>>, %arg3: memref<64x16xbf16, #tpu.memory_space<vmem>>, %arg4: memref<8x16xf32, #tpu.memory_space<vmem>>) attributes {dimension_semantics = [#tpu.dimension_semantics<parallel>], iteration_bounds = array<i64: 2>, scalar_prefetch = 0 : i64, scratch_operands = 0 : i64, tpu.core_type = #tpu.core_type<tc>, window_params = [{transform_indices = @transform_0, window_bounds = array<i64: 64, 48>}, {pipeline_mode = #tpu.pipeline_mode<synchronous>, transform_indices = @transform_1, window_bounds = array<i64: 48, 16>}, {transform_indices = @transform_2, window_bounds = array<i64: 64, 16>}, {transform_indices = @transform_3, window_bounds = array<i64: 8, 16>}]} {
    %c0 = arith.constant 0 : index
    %c0_0 = arith.constant 0 : index
    %0 = vector.load %arg1[%c0, %c0_0] : memref<64x48xbf16, #tpu.memory_space<vmem>>, vector<64x48xbf16>
    %c0_1 = arith.constant 0 : index
    %c0_2 = arith.constant 0 : index
    %1 = vector.load %arg2[%c0_1, %c0_2] : memref<48x16xbf16, #tpu.memory_space<vmem>>, vector<48x16xbf16>
    %cst = arith.constant dense<0.000000e+00> : vector<64x16xf32>
    %2 = tpu.matmul %0, %1, %cst {dimension_numbers = #tpu.dot_dimension_numbers<[1], [0], [0], [1], [0, 0, 1, 1], [], []>} : vector<64x48xbf16>, vector<48x16xbf16>, vector<64x16xf32> -> vector<64x16xf32>
    %cst_3 = arith.constant dense<0.000000e+00> : vector<16xf32>
    %3 = vector.multi_reduction <add>, %2, %cst_3 [0] : vector<64x16xf32> to vector<16xf32>
    %4 = vector.shape_cast %3 : vector<16xf32> to vector<1x16xf32>
    %5 = arith.mulf %2, %2 : vector<64x16xf32>
    %cst_4 = arith.constant dense<0.000000e+00> : vector<16xf32>
    %6 = vector.multi_reduction <add>, %5, %cst_4 [0] : vector<64x16xf32> to vector<16xf32>
    %7 = vector.shape_cast %6 : vector<16xf32> to vector<1x16xf32>
    %8 = tpu.iota {dimensions = array<i32: 0>} : vector<8x16xi32>
    %c0_i32 = arith.constant 0 : i32
    %9 = vector.broadcast %c0_i32 : i32 to vector<8x16xi32>
    %10 = arith.cmpi eq, %8, %9 : vector<8x16xi32>
    %cst_5 = arith.constant 0.000000e+00 : f32
    %11 = vector.shape_cast %4 : vector<1x16xf32> to vector<1x16xf32>
    %12 = vector.broadcast %11 : vector<1x16xf32> to vector<8x16xf32>
    %13 = vector.broadcast %cst_5 : f32 to vector<8x16xf32>
    %14 = arith.select %10, %12, %13 : vector<8x16xi1>, vector<8x16xf32>
    %c1_i32 = arith.constant 1 : i32
    %15 = vector.broadcast %c1_i32 : i32 to vector<8x16xi32>
    %16 = arith.cmpi eq, %8, %15 : vector<8x16xi32>
    %cst_6 = arith.constant 0.000000e+00 : f32
    %17 = vector.shape_cast %7 : vector<1x16xf32> to vector<1x16xf32>
    %18 = vector.broadcast %17 : vector<1x16xf32> to vector<8x16xf32>
    %19 = vector.broadcast %cst_6 : f32 to vector<8x16xf32>
    %20 = arith.select %16, %18, %19 : vector<8x16xi1>, vector<8x16xf32>
    %21 = arith.addf %14, %20 : vector<8x16xf32>
    %c0_7 = arith.constant 0 : index
    %c0_8 = arith.constant 0 : index
    %22 = vector.load %arg4[%c0_7, %c0_8] : memref<8x16xf32, #tpu.memory_space<vmem>>, vector<8x16xf32>
    tpu.vector_store %arg4[%c0_7, %c0_8], %21 {strides = array<i32>} : memref<8x16xf32, #tpu.memory_space<vmem>>, vector<8x16xf32>,
    %23 = arith.truncf %2 : vector<64x16xf32> to vector<64x16xbf16>
    %c0_9 = arith.constant 0 : index
    %c0_10 = arith.constant 0 : index
    %24 = vector.load %arg3[%c0_9, %c0_10] : memref<64x16xbf16, #tpu.memory_space<vmem>>, vector<64x16xbf16>
    tpu.vector_store %arg3[%c0_9, %c0_10], %23 {strides = array<i32>} : memref<64x16xbf16, #tpu.memory_space<vmem>>, vector<64x16xbf16>,
    return
  }
  func.func @transform_0(%arg0: i32) -> (i32, i32) {
    %c0_i32 = arith.constant 0 : i32
    %c0_i32_0 = arith.constant 0 : i32
    return %arg0, %c0_i32 : i32, i32
  }
  func.func @transform_1(%arg0: i32) -> (i32, i32) {
    %c0_i32 = arith.constant 0 : i32
    %c0_i32_0 = arith.constant 0 : i32
    %c0_i32_1 = arith.constant 0 : i32
    return %c0_i32, %c0_i32_0 : i32, i32
  }
  func.func @transform_2(%arg0: i32) -> (i32, i32) {
    %c0_i32 = arith.constant 0 : i32
    %c0_i32_0 = arith.constant 0 : i32
    return %arg0, %c0_i32 : i32, i32
  }
  func.func @transform_3(%arg0: i32) -> (i32, i32) {
    %c0_i32 = arith.constant 0 : i32
    %c0_i32_0 = arith.constant 0 : i32
    return %arg0, %c0_i32 : i32, i32
  }
}

module attributes {stable_mosaic.version = 11 : i64} {
  func.func @_gemm_stats_kernel(%arg0: i32, %arg1: memref<16x80xbf16, #tpu.memory_space<vmem>>, %arg2: memref<80x16xbf16, #tpu.memory_space<vmem>>, %arg3: memref<16x16xbf16, #tpu.memory_space<vmem>>, %arg4: memref<8x16xf32, #tpu.memory_space<vmem>>) attributes {dimension_semantics = [#tpu.dimension_semantics<parallel>], iteration_bounds = array<i64: 2>, scalar_prefetch = 0 : i64, scratch_operands = 0 : i64, tpu.core_type = #tpu.core_type<tc>, window_params = [{transform_indices = @transform_0, window_bounds = array<i64: 16, 80>}, {pipeline_mode = #tpu.pipeline_mode<synchronous>, transform_indices = @transform_1, window_bounds = array<i64: 80, 16>}, {transform_indices = @transform_2, window_bounds = array<i64: 16, 16>}, {transform_indices = @transform_3, window_bounds = array<i64: 8, 16>}]} {
    %c0 = arith.constant 0 : index
    %c0_0 = arith.constant 0 : index
    %0 = vector.load %arg1[%c0, %c0_0] : memref<16x80xbf16, #tpu.memory_space<vmem>>, vector<16x80xbf16>
    %c0_1 = arith.constant 0 : index
    %c0_2 = arith.constant 0 : index
    %1 = vector.load %arg2[%c0_1, %c0_2] : memref<80x16xbf16, #tpu.memory_space<vmem>>, vector<80x16xbf16>
    %cst = arith.constant dense<0.000000e+00> : vector<16x16xf32>
    %2 = tpu.matmul %0, %1, %cst {dimension_numbers = #tpu.dot_dimension_numbers<[1], [0], [0], [1], [0, 0, 1, 1], [], []>} : vector<16x80xbf16>, vector<80x16xbf16>, vector<16x16xf32> -> vector<16x16xf32>
    %cst_3 = arith.constant dense<0.000000e+00> : vector<16xf32>
    %3 = vector.multi_reduction <add>, %2, %cst_3 [0] : vector<16x16xf32> to vector<16xf32>
    %4 = vector.shape_cast %3 : vector<16xf32> to vector<1x16xf32>
    %5 = arith.mulf %2, %2 : vector<16x16xf32>
    %cst_4 = arith.constant dense<0.000000e+00> : vector<16xf32>
    %6 = vector.multi_reduction <add>, %5, %cst_4 [0] : vector<16x16xf32> to vector<16xf32>
    %7 = vector.shape_cast %6 : vector<16xf32> to vector<1x16xf32>
    %8 = tpu.iota {dimensions = array<i32: 0>} : vector<8x16xi32>
    %c0_i32 = arith.constant 0 : i32
    %9 = vector.broadcast %c0_i32 : i32 to vector<8x16xi32>
    %10 = arith.cmpi eq, %8, %9 : vector<8x16xi32>
    %cst_5 = arith.constant 0.000000e+00 : f32
    %11 = vector.shape_cast %4 : vector<1x16xf32> to vector<1x16xf32>
    %12 = vector.broadcast %11 : vector<1x16xf32> to vector<8x16xf32>
    %13 = vector.broadcast %cst_5 : f32 to vector<8x16xf32>
    %14 = arith.select %10, %12, %13 : vector<8x16xi1>, vector<8x16xf32>
    %c1_i32 = arith.constant 1 : i32
    %15 = vector.broadcast %c1_i32 : i32 to vector<8x16xi32>
    %16 = arith.cmpi eq, %8, %15 : vector<8x16xi32>
    %cst_6 = arith.constant 0.000000e+00 : f32
    %17 = vector.shape_cast %7 : vector<1x16xf32> to vector<1x16xf32>
    %18 = vector.broadcast %17 : vector<1x16xf32> to vector<8x16xf32>
    %19 = vector.broadcast %cst_6 : f32 to vector<8x16xf32>
    %20 = arith.select %16, %18, %19 : vector<8x16xi1>, vector<8x16xf32>
    %21 = arith.addf %14, %20 : vector<8x16xf32>
    %c0_7 = arith.constant 0 : index
    %c0_8 = arith.constant 0 : index
    %22 = vector.load %arg4[%c0_7, %c0_8] : memref<8x16xf32, #tpu.memory_space<vmem>>, vector<8x16xf32>
    tpu.vector_store %arg4[%c0_7, %c0_8], %21 {strides = array<i32>} : memref<8x16xf32, #tpu.memory_space<vmem>>, vector<8x16xf32>,
    %23 = arith.truncf %2 : vector<16x16xf32> to vector<16x16xbf16>
    %c0_9 = arith.constant 0 : index
    %c0_10 = arith.constant 0 : index
    %24 = vector.load %arg3[%c0_9, %c0_10] : memref<16x16xbf16, #tpu.memory_space<vmem>>, vector<16x16xbf16>
    tpu.vector_store %arg3[%c0_9, %c0_10], %23 {strides = array<i32>} : memref<16x16xbf16, #tpu.memory_space<vmem>>, vector<16x16xbf16>,
    return
  }
  func.func @transform_0(%arg0: i32) -> (i32, i32) {
    %c0_i32 = arith.constant 0 : i32
    %c0_i32_0 = arith.constant 0 : i32
    return %arg0, %c0_i32 : i32, i32
  }
  func.func @transform_1(%arg0: i32) -> (i32, i32) {
    %c0_i32 = arith.constant 0 : i32
    %c0_i32_0 = arith.constant 0 : i32
    %c0_i32_1 = arith.constant 0 : i32
    return %c0_i32, %c0_i32_0 : i32, i32
  }
  func.func @transform_2(%arg0: i32) -> (i32, i32) {
    %c0_i32 = arith.constant 0 : i32
    %c0_i32_0 = arith.constant 0 : i32
    return %arg0, %c0_i32 : i32, i32
  }
  func.func @transform_3(%arg0: i32) -> (i32, i32) {
    %c0_i32 = arith.constant 0 : i32
    %c0_i32_0 = arith.constant 0 : i32
    return %arg0, %c0_i32 : i32, i32
  }
}

module attributes {stable_mosaic.version = 11 : i64} {
  func.func @_gemm_stats_kernel(%arg0: i32, %arg1: memref<16x144xbf16, #tpu.memory_space<vmem>>, %arg2: memref<144x32xbf16, #tpu.memory_space<vmem>>, %arg3: memref<16x32xbf16, #tpu.memory_space<vmem>>, %arg4: memref<8x32xf32, #tpu.memory_space<vmem>>) attributes {dimension_semantics = [#tpu.dimension_semantics<parallel>], iteration_bounds = array<i64: 1>, scalar_prefetch = 0 : i64, scratch_operands = 0 : i64, tpu.core_type = #tpu.core_type<tc>, window_params = [{transform_indices = @transform_0, window_bounds = array<i64: 16, 144>}, {pipeline_mode = #tpu.pipeline_mode<synchronous>, transform_indices = @transform_1, window_bounds = array<i64: 144, 32>}, {transform_indices = @transform_2, window_bounds = array<i64: 16, 32>}, {transform_indices = @transform_3, window_bounds = array<i64: 8, 32>}]} {
    %c0 = arith.constant 0 : index
    %c0_0 = arith.constant 0 : index
    %0 = vector.load %arg1[%c0, %c0_0] : memref<16x144xbf16, #tpu.memory_space<vmem>>, vector<16x144xbf16>
    %c0_1 = arith.constant 0 : index
    %c0_2 = arith.constant 0 : index
    %1 = vector.load %arg2[%c0_1, %c0_2] : memref<144x32xbf16, #tpu.memory_space<vmem>>, vector<144x32xbf16>
    %cst = arith.constant dense<0.000000e+00> : vector<16x32xf32>
    %2 = tpu.matmul %0, %1, %cst {dimension_numbers = #tpu.dot_dimension_numbers<[1], [0], [0], [1], [0, 0, 1, 1], [], []>} : vector<16x144xbf16>, vector<144x32xbf16>, vector<16x32xf32> -> vector<16x32xf32>
    %cst_3 = arith.constant dense<0.000000e+00> : vector<32xf32>
    %3 = vector.multi_reduction <add>, %2, %cst_3 [0] : vector<16x32xf32> to vector<32xf32>
    %4 = vector.shape_cast %3 : vector<32xf32> to vector<1x32xf32>
    %5 = arith.mulf %2, %2 : vector<16x32xf32>
    %cst_4 = arith.constant dense<0.000000e+00> : vector<32xf32>
    %6 = vector.multi_reduction <add>, %5, %cst_4 [0] : vector<16x32xf32> to vector<32xf32>
    %7 = vector.shape_cast %6 : vector<32xf32> to vector<1x32xf32>
    %8 = tpu.iota {dimensions = array<i32: 0>} : vector<8x32xi32>
    %c0_i32 = arith.constant 0 : i32
    %9 = vector.broadcast %c0_i32 : i32 to vector<8x32xi32>
    %10 = arith.cmpi eq, %8, %9 : vector<8x32xi32>
    %cst_5 = arith.constant 0.000000e+00 : f32
    %11 = vector.shape_cast %4 : vector<1x32xf32> to vector<1x32xf32>
    %12 = vector.broadcast %11 : vector<1x32xf32> to vector<8x32xf32>
    %13 = vector.broadcast %cst_5 : f32 to vector<8x32xf32>
    %14 = arith.select %10, %12, %13 : vector<8x32xi1>, vector<8x32xf32>
    %c1_i32 = arith.constant 1 : i32
    %15 = vector.broadcast %c1_i32 : i32 to vector<8x32xi32>
    %16 = arith.cmpi eq, %8, %15 : vector<8x32xi32>
    %cst_6 = arith.constant 0.000000e+00 : f32
    %17 = vector.shape_cast %7 : vector<1x32xf32> to vector<1x32xf32>
    %18 = vector.broadcast %17 : vector<1x32xf32> to vector<8x32xf32>
    %19 = vector.broadcast %cst_6 : f32 to vector<8x32xf32>
    %20 = arith.select %16, %18, %19 : vector<8x32xi1>, vector<8x32xf32>
    %21 = arith.addf %14, %20 : vector<8x32xf32>
    %c0_7 = arith.constant 0 : index
    %c0_8 = arith.constant 0 : index
    %22 = vector.load %arg4[%c0_7, %c0_8] : memref<8x32xf32, #tpu.memory_space<vmem>>, vector<8x32xf32>
    tpu.vector_store %arg4[%c0_7, %c0_8], %21 {strides = array<i32>} : memref<8x32xf32, #tpu.memory_space<vmem>>, vector<8x32xf32>,
    %23 = arith.truncf %2 : vector<16x32xf32> to vector<16x32xbf16>
    %c0_9 = arith.constant 0 : index
    %c0_10 = arith.constant 0 : index
    %24 = vector.load %arg3[%c0_9, %c0_10] : memref<16x32xbf16, #tpu.memory_space<vmem>>, vector<16x32xbf16>
    tpu.vector_store %arg3[%c0_9, %c0_10], %23 {strides = array<i32>} : memref<16x32xbf16, #tpu.memory_space<vmem>>, vector<16x32xbf16>,
    return
  }
  func.func @transform_0(%arg0: i32) -> (i32, i32) {
    %c0_i32 = arith.constant 0 : i32
    %c0_i32_0 = arith.constant 0 : i32
    return %arg0, %c0_i32 : i32, i32
  }
  func.func @transform_1(%arg0: i32) -> (i32, i32) {
    %c0_i32 = arith.constant 0 : i32
    %c0_i32_0 = arith.constant 0 : i32
    %c0_i32_1 = arith.constant 0 : i32
    return %c0_i32, %c0_i32_0 : i32, i32
  }
  func.func @transform_2(%arg0: i32) -> (i32, i32) {
    %c0_i32 = arith.constant 0 : i32
    %c0_i32_0 = arith.constant 0 : i32
    return %arg0, %c0_i32 : i32, i32
  }
  func.func @transform_3(%arg0: i32) -> (i32, i32) {
    %c0_i32 = arith.constant 0 : i32
    %c0_i32_0 = arith.constant 0 : i32
    return %arg0, %c0_i32 : i32, i32
  }
}

module attributes {stable_mosaic.version = 11 : i64} {
  func.func @_gemm_stats_kernel(%arg0: i32, %arg1: memref<16x288xbf16, #tpu.memory_space<vmem>>, %arg2: memref<288x32xbf16, #tpu.memory_space<vmem>>, %arg3: memref<16x32xbf16, #tpu.memory_space<vmem>>, %arg4: memref<8x32xf32, #tpu.memory_space<vmem>>) attributes {dimension_semantics = [#tpu.dimension_semantics<parallel>], iteration_bounds = array<i64: 1>, scalar_prefetch = 0 : i64, scratch_operands = 0 : i64, tpu.core_type = #tpu.core_type<tc>, window_params = [{transform_indices = @transform_0, window_bounds = array<i64: 16, 288>}, {pipeline_mode = #tpu.pipeline_mode<synchronous>, transform_indices = @transform_1, window_bounds = array<i64: 288, 32>}, {transform_indices = @transform_2, window_bounds = array<i64: 16, 32>}, {transform_indices = @transform_3, window_bounds = array<i64: 8, 32>}]} {
    %c0 = arith.constant 0 : index
    %c0_0 = arith.constant 0 : index
    %0 = vector.load %arg1[%c0, %c0_0] : memref<16x288xbf16, #tpu.memory_space<vmem>>, vector<16x288xbf16>
    %c0_1 = arith.constant 0 : index
    %c0_2 = arith.constant 0 : index
    %1 = vector.load %arg2[%c0_1, %c0_2] : memref<288x32xbf16, #tpu.memory_space<vmem>>, vector<288x32xbf16>
    %cst = arith.constant dense<0.000000e+00> : vector<16x32xf32>
    %2 = tpu.matmul %0, %1, %cst {dimension_numbers = #tpu.dot_dimension_numbers<[1], [0], [0], [1], [0, 0, 1, 1], [], []>} : vector<16x288xbf16>, vector<288x32xbf16>, vector<16x32xf32> -> vector<16x32xf32>
    %cst_3 = arith.constant dense<0.000000e+00> : vector<32xf32>
    %3 = vector.multi_reduction <add>, %2, %cst_3 [0] : vector<16x32xf32> to vector<32xf32>
    %4 = vector.shape_cast %3 : vector<32xf32> to vector<1x32xf32>
    %5 = arith.mulf %2, %2 : vector<16x32xf32>
    %cst_4 = arith.constant dense<0.000000e+00> : vector<32xf32>
    %6 = vector.multi_reduction <add>, %5, %cst_4 [0] : vector<16x32xf32> to vector<32xf32>
    %7 = vector.shape_cast %6 : vector<32xf32> to vector<1x32xf32>
    %8 = tpu.iota {dimensions = array<i32: 0>} : vector<8x32xi32>
    %c0_i32 = arith.constant 0 : i32
    %9 = vector.broadcast %c0_i32 : i32 to vector<8x32xi32>
    %10 = arith.cmpi eq, %8, %9 : vector<8x32xi32>
    %cst_5 = arith.constant 0.000000e+00 : f32
    %11 = vector.shape_cast %4 : vector<1x32xf32> to vector<1x32xf32>
    %12 = vector.broadcast %11 : vector<1x32xf32> to vector<8x32xf32>
    %13 = vector.broadcast %cst_5 : f32 to vector<8x32xf32>
    %14 = arith.select %10, %12, %13 : vector<8x32xi1>, vector<8x32xf32>
    %c1_i32 = arith.constant 1 : i32
    %15 = vector.broadcast %c1_i32 : i32 to vector<8x32xi32>
    %16 = arith.cmpi eq, %8, %15 : vector<8x32xi32>
    %cst_6 = arith.constant 0.000000e+00 : f32
    %17 = vector.shape_cast %7 : vector<1x32xf32> to vector<1x32xf32>
    %18 = vector.broadcast %17 : vector<1x32xf32> to vector<8x32xf32>
    %19 = vector.broadcast %cst_6 : f32 to vector<8x32xf32>
    %20 = arith.select %16, %18, %19 : vector<8x32xi1>, vector<8x32xf32>
    %21 = arith.addf %14, %20 : vector<8x32xf32>
    %c0_7 = arith.constant 0 : index
    %c0_8 = arith.constant 0 : index
    %22 = vector.load %arg4[%c0_7, %c0_8] : memref<8x32xf32, #tpu.memory_space<vmem>>, vector<8x32xf32>
    tpu.vector_store %arg4[%c0_7, %c0_8], %21 {strides = array<i32>} : memref<8x32xf32, #tpu.memory_space<vmem>>, vector<8x32xf32>,
    %23 = arith.truncf %2 : vector<16x32xf32> to vector<16x32xbf16>
    %c0_9 = arith.constant 0 : index
    %c0_10 = arith.constant 0 : index
    %24 = vector.load %arg3[%c0_9, %c0_10] : memref<16x32xbf16, #tpu.memory_space<vmem>>, vector<16x32xbf16>
    tpu.vector_store %arg3[%c0_9, %c0_10], %23 {strides = array<i32>} : memref<16x32xbf16, #tpu.memory_space<vmem>>, vector<16x32xbf16>,
    return
  }
  func.func @transform_0(%arg0: i32) -> (i32, i32) {
    %c0_i32 = arith.constant 0 : i32
    %c0_i32_0 = arith.constant 0 : i32
    return %arg0, %c0_i32 : i32, i32
  }
  func.func @transform_1(%arg0: i32) -> (i32, i32) {
    %c0_i32 = arith.constant 0 : i32
    %c0_i32_0 = arith.constant 0 : i32
    %c0_i32_1 = arith.constant 0 : i32
    return %c0_i32, %c0_i32_0 : i32, i32
  }
  func.func @transform_2(%arg0: i32) -> (i32, i32) {
    %c0_i32 = arith.constant 0 : i32
    %c0_i32_0 = arith.constant 0 : i32
    return %arg0, %c0_i32 : i32, i32
  }
  func.func @transform_3(%arg0: i32) -> (i32, i32) {
    %c0_i32 = arith.constant 0 : i32
    %c0_i32_0 = arith.constant 0 : i32
    return %arg0, %c0_i32 : i32, i32
  }
}

module attributes {stable_mosaic.version = 11 : i64} {
  func.func @_gemm_stats_kernel(%arg0: i32, %arg1: memref<16x288xbf16, #tpu.memory_space<vmem>>, %arg2: memref<288x16xbf16, #tpu.memory_space<vmem>>, %arg3: memref<16x16xbf16, #tpu.memory_space<vmem>>, %arg4: memref<8x16xf32, #tpu.memory_space<vmem>>) attributes {dimension_semantics = [#tpu.dimension_semantics<parallel>], iteration_bounds = array<i64: 1>, scalar_prefetch = 0 : i64, scratch_operands = 0 : i64, tpu.core_type = #tpu.core_type<tc>, window_params = [{transform_indices = @transform_0, window_bounds = array<i64: 16, 288>}, {pipeline_mode = #tpu.pipeline_mode<synchronous>, transform_indices = @transform_1, window_bounds = array<i64: 288, 16>}, {transform_indices = @transform_2, window_bounds = array<i64: 16, 16>}, {transform_indices = @transform_3, window_bounds = array<i64: 8, 16>}]} {
    %c0 = arith.constant 0 : index
    %c0_0 = arith.constant 0 : index
    %0 = vector.load %arg1[%c0, %c0_0] : memref<16x288xbf16, #tpu.memory_space<vmem>>, vector<16x288xbf16>
    %c0_1 = arith.constant 0 : index
    %c0_2 = arith.constant 0 : index
    %1 = vector.load %arg2[%c0_1, %c0_2] : memref<288x16xbf16, #tpu.memory_space<vmem>>, vector<288x16xbf16>
    %cst = arith.constant dense<0.000000e+00> : vector<16x16xf32>
    %2 = tpu.matmul %0, %1, %cst {dimension_numbers = #tpu.dot_dimension_numbers<[1], [0], [0], [1], [0, 0, 1, 1], [], []>} : vector<16x288xbf16>, vector<288x16xbf16>, vector<16x16xf32> -> vector<16x16xf32>
    %cst_3 = arith.constant dense<0.000000e+00> : vector<16xf32>
    %3 = vector.multi_reduction <add>, %2, %cst_3 [0] : vector<16x16xf32> to vector<16xf32>
    %4 = vector.shape_cast %3 : vector<16xf32> to vector<1x16xf32>
    %5 = arith.mulf %2, %2 : vector<16x16xf32>
    %cst_4 = arith.constant dense<0.000000e+00> : vector<16xf32>
    %6 = vector.multi_reduction <add>, %5, %cst_4 [0] : vector<16x16xf32> to vector<16xf32>
    %7 = vector.shape_cast %6 : vector<16xf32> to vector<1x16xf32>
    %8 = tpu.iota {dimensions = array<i32: 0>} : vector<8x16xi32>
    %c0_i32 = arith.constant 0 : i32
    %9 = vector.broadcast %c0_i32 : i32 to vector<8x16xi32>
    %10 = arith.cmpi eq, %8, %9 : vector<8x16xi32>
    %cst_5 = arith.constant 0.000000e+00 : f32
    %11 = vector.shape_cast %4 : vector<1x16xf32> to vector<1x16xf32>
    %12 = vector.broadcast %11 : vector<1x16xf32> to vector<8x16xf32>
    %13 = vector.broadcast %cst_5 : f32 to vector<8x16xf32>
    %14 = arith.select %10, %12, %13 : vector<8x16xi1>, vector<8x16xf32>
    %c1_i32 = arith.constant 1 : i32
    %15 = vector.broadcast %c1_i32 : i32 to vector<8x16xi32>
    %16 = arith.cmpi eq, %8, %15 : vector<8x16xi32>
    %cst_6 = arith.constant 0.000000e+00 : f32
    %17 = vector.shape_cast %7 : vector<1x16xf32> to vector<1x16xf32>
    %18 = vector.broadcast %17 : vector<1x16xf32> to vector<8x16xf32>
    %19 = vector.broadcast %cst_6 : f32 to vector<8x16xf32>
    %20 = arith.select %16, %18, %19 : vector<8x16xi1>, vector<8x16xf32>
    %21 = arith.addf %14, %20 : vector<8x16xf32>
    %c0_7 = arith.constant 0 : index
    %c0_8 = arith.constant 0 : index
    %22 = vector.load %arg4[%c0_7, %c0_8] : memref<8x16xf32, #tpu.memory_space<vmem>>, vector<8x16xf32>
    tpu.vector_store %arg4[%c0_7, %c0_8], %21 {strides = array<i32>} : memref<8x16xf32, #tpu.memory_space<vmem>>, vector<8x16xf32>,
    %23 = arith.truncf %2 : vector<16x16xf32> to vector<16x16xbf16>
    %c0_9 = arith.constant 0 : index
    %c0_10 = arith.constant 0 : index
    %24 = vector.load %arg3[%c0_9, %c0_10] : memref<16x16xbf16, #tpu.memory_space<vmem>>, vector<16x16xbf16>
    tpu.vector_store %arg3[%c0_9, %c0_10], %23 {strides = array<i32>} : memref<16x16xbf16, #tpu.memory_space<vmem>>, vector<16x16xbf16>,
    return
  }
  func.func @transform_0(%arg0: i32) -> (i32, i32) {
    %c0_i32 = arith.constant 0 : i32
    %c0_i32_0 = arith.constant 0 : i32
    return %arg0, %c0_i32 : i32, i32
  }
  func.func @transform_1(%arg0: i32) -> (i32, i32) {
    %c0_i32 = arith.constant 0 : i32
    %c0_i32_0 = arith.constant 0 : i32
    %c0_i32_1 = arith.constant 0 : i32
    return %c0_i32, %c0_i32_0 : i32, i32
  }
  func.func @transform_2(%arg0: i32) -> (i32, i32) {
    %c0_i32 = arith.constant 0 : i32
    %c0_i32_0 = arith.constant 0 : i32
    return %arg0, %c0_i32 : i32, i32
  }
  func.func @transform_3(%arg0: i32) -> (i32, i32) {
    %c0_i32 = arith.constant 0 : i32
    %c0_i32_0 = arith.constant 0 : i32
    return %arg0, %c0_i32 : i32, i32
  }
}

module attributes {stable_mosaic.version = 11 : i64} {
  func.func @_scale_shift_relu_kernel(%arg0: i32, %arg1: memref<16x16xbf16, #tpu.memory_space<vmem>>, %arg2: memref<1x16xf32, #tpu.memory_space<vmem>>, %arg3: memref<1x16xf32, #tpu.memory_space<vmem>>, %arg4: memref<16x16xf32, #tpu.memory_space<vmem>>) attributes {dimension_semantics = [#tpu.dimension_semantics<parallel>], iteration_bounds = array<i64: 1>, scalar_prefetch = 0 : i64, scratch_operands = 0 : i64, tpu.core_type = #tpu.core_type<tc>, window_params = [{transform_indices = @transform_0, window_bounds = array<i64: 16, 16>}, {pipeline_mode = #tpu.pipeline_mode<synchronous>, transform_indices = @transform_1, window_bounds = array<i64: 1, 16>}, {pipeline_mode = #tpu.pipeline_mode<synchronous>, transform_indices = @transform_2, window_bounds = array<i64: 1, 16>}, {transform_indices = @transform_3, window_bounds = array<i64: 16, 16>}]} {
    %c0 = arith.constant 0 : index
    %c0_0 = arith.constant 0 : index
    %0 = vector.load %arg1[%c0, %c0_0] : memref<16x16xbf16, #tpu.memory_space<vmem>>, vector<16x16xbf16>
    %1 = arith.extf %0 : vector<16x16xbf16> to vector<16x16xf32>
    %c0_1 = arith.constant 0 : index
    %c0_2 = arith.constant 0 : index
    %2 = vector.load %arg2[%c0_1, %c0_2] : memref<1x16xf32, #tpu.memory_space<vmem>>, vector<1x16xf32>
    %3 = vector.broadcast %2 : vector<1x16xf32> to vector<16x16xf32>
    %4 = arith.mulf %1, %3 : vector<16x16xf32>
    %c0_3 = arith.constant 0 : index
    %c0_4 = arith.constant 0 : index
    %5 = vector.load %arg3[%c0_3, %c0_4] : memref<1x16xf32, #tpu.memory_space<vmem>>, vector<1x16xf32>
    %6 = vector.broadcast %5 : vector<1x16xf32> to vector<16x16xf32>
    %7 = arith.addf %4, %6 : vector<16x16xf32>
    %cst = arith.constant 0.000000e+00 : f32
    %8 = vector.broadcast %cst : f32 to vector<16x16xf32>
    %9 = arith.maximumf %7, %8 : vector<16x16xf32>
    %c0_5 = arith.constant 0 : index
    %c0_6 = arith.constant 0 : index
    %10 = vector.load %arg4[%c0_5, %c0_6] : memref<16x16xf32, #tpu.memory_space<vmem>>, vector<16x16xf32>
    tpu.vector_store %arg4[%c0_5, %c0_6], %9 {strides = array<i32>} : memref<16x16xf32, #tpu.memory_space<vmem>>, vector<16x16xf32>,
    return
  }
  func.func @transform_0(%arg0: i32) -> (i32, i32) {
    %c0_i32 = arith.constant 0 : i32
    %c0_i32_0 = arith.constant 0 : i32
    return %arg0, %c0_i32 : i32, i32
  }
  func.func @transform_1(%arg0: i32) -> (i32, i32) {
    %c0_i32 = arith.constant 0 : i32
    %c0_i32_0 = arith.constant 0 : i32
    %c0_i32_1 = arith.constant 0 : i32
    return %c0_i32, %c0_i32_0 : i32, i32
  }
  func.func @transform_2(%arg0: i32) -> (i32, i32) {
    %c0_i32 = arith.constant 0 : i32
    %c0_i32_0 = arith.constant 0 : i32
    %c0_i32_1 = arith.constant 0 : i32
    return %c0_i32, %c0_i32_0 : i32, i32
  }
  func.func @transform_3(%arg0: i32) -> (i32, i32) {
    %c0_i32 = arith.constant 0 : i32
    %c0_i32_0 = arith.constant 0 : i32
    return %arg0, %c0_i32 : i32, i32
  }
}

</mosaic_0001>

<bundles_post_ra>
// kernel: vae_encoder_forward.6
= control target key start
LH: loop header
LB: loop body
LE: loop exit
PB: predicated region body
PF: predicated region fallthrough
CT: control target
= control target key end

     0   :  { %s539_s12 = smov 0   ;;  %s608_s0 = inlined_call_operand.vmem [shape: bf16[128,48], index: 0, kind: input, shape index: {}]   ;;  %s609_s1 = inlined_call_operand.vmem [shape: bf16[48,16], index: 1, kind: input, shape index: {}]   ;;  %s610_s2 = inlined_call_operand.vmem [shape: bf16[128,16], index: 2, kind: output, shape index: {0}]   ;;  %s611_s3 = inlined_call_operand.vmem [shape: f32[16,16], index: 3, kind: output, shape index: {1}]  }
   0x1 LB: > { %s545_s13 = sadd.s32 4294967295, %s517_s12   ;;  %p447_p0 = scmp.ge.s32.totalorder %s517_s12, 1  ;;  %s517_s12 = sphi %s539_s12, %s14_s12  }
   0x2   : > { %p141_p1 = scmp.lt.s32.totalorder %s517_s12, 3 }
   0x4   : > { %p142_p2 = pnand %p447_p0, %p141_p1 }
   0x5   : > { %s448_s16 = sshll.u32 (!%p142_p2), %s545_s13, 3  ;;  %p181_p4 = scmp.lt.s32.totalorder (!%p142_p2), %s545_s13, 1 }
   0x6   : > { %145 = sbr.rel (%p142_p2) target bundleno = 190 (0xbe), region = 28  ;;  %p170_p3 = scmp.lt.s32.totalorder (!%p142_p2), %s448_s16, 15 }
   0xb   : > { %v493_v0 = vld [vmem:[%s609_s1 + $0x10] sm:$0xff]  ;;  %v492_v1 = vld [vmem:[%s609_s1 + $0x8] sm:$0xff]  ;;  %s613_s16 = smov (!%p170_p3, %s448_s16), 15  ;;  %v491_v2 = vld [vmem:[%s609_s1] sm:$0xff]  ;;  %vm238_vm0 = vcmask 392192   ;;  %vm347_vm1 = vcmask 125952  }
   0xc   : > { %256 = vmatpush.bf16.msra.mxu0 %v493_v0  ;;  %494 = vmatpush.bf16.msra.mxu1 %v493_v0  ;;  %s449_s19 = sshll.u32 %s613_s16, 2  ;;  %vm280_vm2 = vcmask 130048   ;;  %s615_s13 = smov (!%p181_p4, %s545_s13), 1 }
   0xd   : > { %495 = vmatpush.bf16.msra.mxu2 %v493_v0  ;;  %496 = vmatpush.bf16.msra.mxu3 %v493_v0  ;;  %s173_s24 = scalar_lea.vmem %s608_s0, %s449_s19  ;;  %s565_s27 = scalar_lea.vmem %s610_s2, %s449_s19  ;;  %v331_v0 = vlaneseq }
   0xe   : > { %v487_v3 = vld [vmem:[%s173_s24] sm:$0xff]  ;;  %v488_v4 = vld [vmem:[%s173_s24 + $0x8] sm:$0xff]  ;;  %v489_v5 = vld [vmem:[%s173_s24 + $0x10] sm:$0xff]  ;;  %s452_s28 = sshll.u32 %s615_s13, 3 }
   0xf   : > { %v490_v6 = vld [vmem:[%s173_s24 + $0x18] sm:$0xff]  ;;  %s184_s4 = scalar_lea.vmem %s611_s3, %s452_s28 }
  0x10   : > { %257 = vmatpush.bf16.msra.mxu0 %v492_v1  ;;  %497 = vmatpush.bf16.msra.mxu1 %v492_v1 }
  0x11   : > { %498 = vmatpush.bf16.msra.mxu2 %v492_v1  ;;  %499 = vmatpush.bf16.msra.mxu3 %v492_v1 }
  0x14   : > { %258 = vmatpush.bf16.msra.mxu0 %v491_v2  ;;  %500 = vmatpush.bf16.msra.mxu1 %v491_v2 }
  0x15   : > { %501 = vmatpush.bf16.msra.mxu2 %v491_v2  ;;  %502 = vmatpush.bf16.msra.mxu3 %v491_v2 }
  0x17   : > { %481 = vmatmul.msk.bf16.vlgmr.msra.gmra.mxu0 %vm238_vm0, %v487_v3  ;;  %482 = vmatmul.msk.bf16.vlgmr.msra.gmra.mxu1 %vm238_vm0, %v488_v4 }
  0x18   : > { %483 = vmatmul.msk.bf16.vlgmr.msra.gmra.mxu2 %vm238_vm0, %v489_v5  ;;  %484 = vmatmul.msk.bf16.vlgmr.msra.gmra.mxu3 %vm238_vm0, %v490_v6  ;;  %v332_v5 = vshrl.u32 %v331_v0, 7 }
  0x1a   : > { %vm333_vm3 = vcmp.eq.s32.totalorder %v332_v5, 0  ;;  %vm335_vm4 = vcmp.eq.s32.totalorder %v332_v5, 1 }
  0x94   : > { %v260_v7 = vpop.f32.mrf.mxu0  ;;  %v265_v8 = vpop.f32.mrf.mxu1 }
  0x95   : > { %v339_v9 = vpack.c.bf16 %v260_v7, %v260_v7  ;;  %v341_v10 = vpack.c.bf16 %v265_v8, %v265_v8  ;;  %v302_v11 = vmul.f32 %v260_v7, %v260_v7  ;;  %v281_v14 = vsel %vm280_vm2, %v260_v7, 0.0 }
  0x96   : > { %v304_v18 = vmul.f32 %v265_v8, %v265_v8  ;;  %v284_v22 = vsel %vm280_vm2, %v265_v8, 0.0 }
  0x97   : > { %348 = vst.msk [vmem:[%s565_s27] sm:$0xf] %vm347_vm1, %v339_v9  ;;  %v310_v25 = vsel %vm280_vm2, %v302_v11, 0.0 }
  0x98   : > { %350 = vst.msk [vmem:[%s565_s27 + $0x8] sm:$0xf] %vm347_vm1, %v341_v10  ;;  %v313_v31 = vsel %vm280_vm2, %v304_v18, 0.0 }
  0x9b   : > { %v270_v12 = vpop.f32.mrf.mxu2  ;;  %v275_v13 = vpop.f32.mrf.mxu3 }
  0x9c   : > { %v343_v15 = vpack.c.bf16 %v270_v12, %v270_v12  ;;  %v262_v16 = vpop.f32.mrf.mxu0  ;;  %v267_v17 = vpop.f32.mrf.mxu1  ;;  %v345_v19 = vpack.c.bf16 %v275_v13, %v275_v13  ;;  %v306_v32 = vmul.f32 %v270_v12, %v270_v12  ;;  %v288_v36 = vsel %vm280_vm2, %v270_v12, 0.0 }
  0x9d   : > { %v282_v20 = vsel %vm280_vm2, %v262_v16, 0.0  ;;  %v303_v21 = vmul.f32 %v262_v16, %v262_v16  ;;  %v340_v24 = vpack.c.bf16 %v262_v16, %v262_v16  ;;  %v305_v27 = vmul.f32 %v267_v17, %v267_v17 }
  0x9e   : > { %352 = vst.msk [vmem:[%s565_s27 + $0x10] sm:$0xf] %vm347_vm1, %v343_v15  ;;  %v283_v23 = vadd.f32 %v282_v20, %v281_v14  ;;  %v342_v28 = vpack.c.bf16 %v267_v17, %v267_v17  ;;  %v286_v33 = vsel %vm280_vm2, %v267_v17, 0.0  ;;  %v308_v40 = vmul.f32 %v275_v13, %v275_v13 }
  0x9f   : > { %354 = vst.msk [vmem:[%s565_s27 + $0x18] sm:$0xf] %vm347_vm1, %v345_v19  ;;  %v311_v26 = vsel %vm280_vm2, %v303_v21, 0.0  ;;  %v315_v37 = vsel %vm280_vm2, %v305_v27, 0.0  ;;  %v317_v44 = vsel %vm280_vm2, %v306_v32, 0.0  ;;  %v292_v50 = vsel %vm280_vm2, %v275_v13, 0.0 }
  0xa0   : > { %v312_v29 = vadd.f32 %v311_v26, %v310_v25  ;;  %349 = vst.msk [vmem:[%s565_s27 + $0x4] sm:$0xf] %vm347_vm1, %v340_v24  ;;  %v285_v30 = vadd.f32 %v284_v22, %v283_v23  ;;  %v321_v55 = vsel %vm280_vm2, %v308_v40, 0.0 }
  0xa1   : > { %351 = vst.msk [vmem:[%s565_s27 + $0xc] sm:$0xf] %vm347_vm1, %v342_v28 }
  0xa2   : > { %v287_v34 = vadd.f32 %v286_v33, %v285_v30  ;;  %v314_v35 = vadd.f32 %v313_v31, %v312_v29 }
  0xa3   : > { %v272_v38 = vpop.f32.mrf.mxu2  ;;  %v277_v39 = vpop.f32.mrf.mxu3 }
  0xa4   : > { %v316_v41 = vadd.f32 %v315_v37, %v314_v35  ;;  %v289_v42 = vadd.f32 %v288_v36, %v287_v34  ;;  %v307_v43 = vmul.f32 %v272_v38, %v272_v38  ;;  %v290_v45 = vsel %vm280_vm2, %v272_v38, 0.0 }
  0xa5   : > { %v344_v46 = vpack.c.bf16 %v272_v38, %v272_v38  ;;  %v346_v47 = vpack.c.bf16 %v277_v39, %v277_v39  ;;  %v309_v52 = vmul.f32 %v277_v39, %v277_v39  ;;  %v294_v56 = vsel %vm280_vm2, %v277_v39, 0.0 }
  0xa6   : > { %v291_v48 = vadd.f32 %v290_v45, %v289_v42  ;;  %v318_v49 = vadd.f32 %v317_v44, %v316_v41  ;;  %v319_v51 = vsel %vm280_vm2, %v307_v43, 0.0 }
  0xa7   : > { %353 = vst.msk [vmem:[%s565_s27 + $0x14] sm:$0xf] %vm347_vm1, %v344_v46  ;;  %v323_v59 = vsel %vm280_vm2, %v309_v52, 0.0 }
  0xa8   : > { %v320_v53 = vadd.f32 %v319_v51, %v318_v49  ;;  %v293_v54 = vadd.f32 %v292_v50, %v291_v48  ;;  %355 = vst.msk [vmem:[%s565_s27 + $0x1c] sm:$0xf] %vm347_vm1, %v346_v47 }
  0xaa   : > { %v295_v57 = vadd.f32 %v294_v56, %v293_v54  ;;  %v322_v58 = vadd.f32 %v321_v55, %v320_v53 }
  0xac   : > { %v296_v60 = vrot.slane %v295_v57, 4  ;;  %v324_v61 = vadd.f32 %v323_v59, %v322_v58 }
  0xae   : > { %v297_v62 = vadd.f32 %v296_v60, %v295_v57  ;;  %v325_v63 = vrot.slane %v324_v61, 4 }
  0xb0   : > { %v298_v1 = vrot.slane %v297_v62, 2  ;;  %v326_v2 = vadd.f32 %v325_v63, %v324_v61 }
  0xb2   : > { %v299_v3 = vadd.f32 %v298_v1, %v297_v62  ;;  %v327_v4 = vrot.slane %v326_v2, 2 }
  0xb4   : > { %v300_v6 = vrot.slane %v299_v3, 1  ;;  %v328_v7 = vadd.f32 %v327_v4, %v326_v2 }
  0xb6   : > { %v301_v8 = vadd.f32 %v300_v6, %v299_v3  ;;  %v329_v9 = vrot.slane %v328_v7, 1 }
  0xb8   : > { %v330_v10 = vadd.f32 %v329_v9, %v328_v7  ;;  %v334_v11 = vsel %vm333_vm3, %v301_v8, 0.0 }
  0xba   : > { %v336_v12 = vsel %vm335_vm4, %v330_v10, 0.0 }
  0xbb   : > { %v337_v13 = vadd.f32 %v336_v12, %v334_v11 }
  0xbd   : > { %338 = vst.msk [vmem:[%s184_s4] sm:$0xff] %vm280_vm2, %v337_v13 }
  0xbe PF: > { %s14_s12 = sadd.s32 1, %s517_s12  }
  0xbf   : > { %p11_p5 = scmp.ge.s32.totalorder %s14_s12, 4  }
  0xc1   :  { %13 = sbr.rel (!%p11_p5) target bundleno = 1 (0x1), region = 70 }

// kernel: vae_encoder_forward.7
= control target key start
LH: loop header
LB: loop body
LE: loop exit
PB: predicated region body
PF: predicated region fallthrough
CT: control target
= control target key end

     0   :  { %s451_s12 = smov 0   ;;  %s496_s0 = inlined_call_operand.vmem [shape: bf16[32,80], index: 0, kind: input, shape index: {}]   ;;  %s497_s1 = inlined_call_operand.vmem [shape: bf16[80,16], index: 1, kind: input, shape index: {}]   ;;  %s498_s2 = inlined_call_operand.vmem [shape: bf16[32,16], index: 2, kind: output, shape index: {0}]   ;;  %s499_s3 = inlined_call_operand.vmem [shape: f32[16,16], index: 3, kind: output, shape index: {1}]  }
   0x1 LB: > { %s457_s13 = sadd.s32 4294967295, %s429_s12   ;;  %p376_p0 = scmp.ge.s32.totalorder %s429_s12, 1  ;;  %s429_s12 = sphi %s451_s12, %s14_s12  }
   0x2   : > { %p141_p1 = scmp.lt.s32.totalorder %s429_s12, 3 }
   0x4   : > { %p142_p2 = pnand %p376_p0, %p141_p1 }
   0x5   : > { %s377_s16 = sshll.u32 (!%p142_p2), %s457_s13, 1  ;;  %p181_p4 = scmp.lt.s32.totalorder (!%p142_p2), %s457_s13, 1 }
   0x6   : > { %145 = sbr.rel (%p142_p2) target bundleno = 186 (0xba), region = 28  ;;  %p170_p3 = scmp.lt.s32.totalorder (!%p142_p2), %s377_s16, 3 }
   0xb   : > { %v414_v0 = vld [vmem:[%s497_s1 + $0x20] sm:$0xff]  ;;  %v413_v1 = vld [vmem:[%s497_s1 + $0x18] sm:$0xff]  ;;  %v412_v2 = vld [vmem:[%s497_s1 + $0x10] sm:$0xff]  ;;  %s501_s16 = smov (!%p170_p3, %s377_s16), 3  ;;  %vm233_vm0 = vcmask 654336   ;;  %vm282_vm1 = vcmask 125952   ;;  %v272_v21 = vlaneseq }
   0xc   : > { %240 = vmatpush.bf16.msra.mxu0 %v414_v0  ;;  %v411_v3 = vld [vmem:[%s497_s1 + $0x8] sm:$0xff]  ;;  %s378_s23 = sshll.u32 %s501_s16, 2  ;;  %v410_v4 = vld [vmem:[%s497_s1] sm:$0xff]  ;;  %vm251_vm2 = vcmask 130048   ;;  %s503_s13 = smov (!%p181_p4, %s457_s13), 1 }
   0xd   : > { %s173_s28 = scalar_lea.vmem %s496_s0, %s378_s23  ;;  %s179_s4 = scalar_lea.vmem %s498_s2, %s378_s23  ;;  %v273_v26 = vshrl.u32 %v272_v21, 7 }
   0xe   : > { %v409_v5 = vld [vmem:[%s173_s28] sm:$0xff]  ;;  %s381_s5 = sshll.u32 %s503_s13, 3 }
   0xf   : > { %vm274_vm3 = vcmp.eq.s32.totalorder %v273_v26, 0  ;;  %vm276_vm4 = vcmp.eq.s32.totalorder %v273_v26, 1  ;;  %s184_s8 = scalar_lea.vmem %s499_s3, %s381_s5 }
  0x10   : > { %241 = vmatpush.bf16.msra.mxu0 %v413_v1 }
  0x14   : > { %242 = vmatpush.bf16.msra.mxu0 %v412_v2 }
  0x18   : > { %243 = vmatpush.bf16.msra.mxu0 %v411_v3 }
  0x1c   : > { %244 = vmatpush.bf16.msra.mxu0 %v410_v4 }
  0x1f   : > { %406 = vmatmul.msk.bf16.vlgmr.msra.gmra.mxu0 %vm233_vm0, %v409_v5 }
  0x9c   : > { %v246_v6 = vpop.f32.mrf.mxu0 }
  0x9d   : > { %v280_v7 = vpack.c.bf16 %v246_v6, %v246_v6  ;;  %v261_v8 = vmul.f32 %v246_v6, %v246_v6  ;;  %v252_v10 = vsel %vm251_vm2, %v246_v6, 0.0 }
  0x9f   : > { %283 = vst.msk [vmem:[%s179_s4] sm:$0xf] %vm282_vm1, %v280_v7  ;;  %v263_v15 = vsel %vm251_vm2, %v261_v8, 0.0 }
  0xa4   : > { %v248_v9 = vpop.f32.mrf.mxu0 }
  0xa5   : > { %v253_v11 = vsel %vm251_vm2, %v248_v9, 0.0  ;;  %v262_v12 = vmul.f32 %v248_v9, %v248_v9  ;;  %v281_v13 = vpack.c.bf16 %v248_v9, %v248_v9 }
  0xa6   : > { %v254_v14 = vadd.f32 %v253_v11, %v252_v10 }
  0xa7   : > { %v264_v16 = vsel %vm251_vm2, %v262_v12, 0.0  ;;  %284 = vst.msk [vmem:[%s179_s4 + $0x4] sm:$0xf] %vm282_vm1, %v281_v13 }
  0xa8   : > { %v255_v17 = vrot.slane %v254_v14, 4  ;;  %v265_v18 = vadd.f32 %v264_v16, %v263_v15 }
  0xaa   : > { %v256_v19 = vadd.f32 %v255_v17, %v254_v14  ;;  %v266_v20 = vrot.slane %v265_v18, 4 }
  0xac   : > { %v257_v22 = vrot.slane %v256_v19, 2  ;;  %v267_v23 = vadd.f32 %v266_v20, %v265_v18 }
  0xae   : > { %v258_v24 = vadd.f32 %v257_v22, %v256_v19  ;;  %v268_v25 = vrot.slane %v267_v23, 2 }
  0xb0   : > { %v259_v27 = vrot.slane %v258_v24, 1  ;;  %v269_v28 = vadd.f32 %v268_v25, %v267_v23 }
  0xb2   : > { %v260_v29 = vadd.f32 %v259_v27, %v258_v24  ;;  %v270_v30 = vrot.slane %v269_v28, 1 }
  0xb4   : > { %v271_v31 = vadd.f32 %v270_v30, %v269_v28  ;;  %v275_v32 = vsel %vm274_vm3, %v260_v29, 0.0 }
  0xb6   : > { %v277_v33 = vsel %vm276_vm4, %v271_v31, 0.0 }
  0xb7   : > { %v278_v34 = vadd.f32 %v277_v33, %v275_v32 }
  0xb9   : > { %279 = vst.msk [vmem:[%s184_s8] sm:$0xff] %vm251_vm2, %v278_v34 }
  0xba PF: > { %s14_s12 = sadd.s32 1, %s429_s12  }
  0xbb   : > { %p11_p5 = scmp.ge.s32.totalorder %s14_s12, 4  }
  0xbd   :  { %13 = sbr.rel (!%p11_p5) target bundleno = 1 (0x1), region = 70 }

// kernel: vae_encoder_forward.8
= control target key start
LH: loop header
LB: loop body
LE: loop exit
PB: predicated region body
PF: predicated region fallthrough
CT: control target
= control target key end

     0   :  { %vm97_vm0 = vcmask 130048   ;;  %vm160_vm1 = vcmask 257024   ;;  %vm129_vm2 = vcmask 261120   ;;  %v150_v34 = vlaneseq  ;;  %s300_s1 = inlined_call_operand.vmem [shape: bf16[144,32], index: 1, kind: input, shape index: {}]   ;;  %s301_s0 = inlined_call_operand.vmem [shape: bf16[16,144], index: 0, kind: input, shape index: {}]   ;;  %s302_s2 = inlined_call_operand.vmem [shape: bf16[16,32], index: 2, kind: output, shape index: {0}]   ;;  %s303_s3 = inlined_call_operand.vmem [shape: f32[8,32], index: 3, kind: output, shape index: {1}]  }
   0x1   :  { %v225_v0 = vld [vmem:[%s300_s1 + $0x38] sm:$0xff]  ;;  %v224_v1 = vld [vmem:[%s300_s1 + $0x30] sm:$0xff]  ;;  %v226_v2 = vld [vmem:[%s300_s1 + $0x40] sm:$0xff] }
   0x2   :  { %101 = vmatpush.bf16.msra.mxu0 %v225_v0  ;;  %v216_v3 = vld [vmem:[%s301_s0 + $0x4] sm:$0xf]  ;;  %v175_v4 = vld [vmem:[%s301_s0 + $0x8] sm:$0xf0]  ;;  %122 = vmatpush.bf16.msra.mxu1 %v226_v2  ;;  %v221_v8 = vld [vmem:[%s300_s1 + $0x18] sm:$0xff]  ;;  %v151_v39 = vshrl.u32 %v150_v34, 7 }
   0x3   :  { %v178_v5 = vor.u32 %v216_v3, %v175_v4  ;;  %v223_v6 = vld [vmem:[%s300_s1 + $0x28] sm:$0xff]  ;;  %v222_v7 = vld [vmem:[%s300_s1 + $0x20] sm:$0xff]  ;;  %v220_v9 = vld [vmem:[%s300_s1 + $0x10] sm:$0xff] }
   0x4   :  { %v219_v10 = vld [vmem:[%s300_s1 + $0x8] sm:$0xff]  ;;  %v218_v11 = vld [vmem:[%s300_s1] sm:$0xff]  ;;  %vm152_vm3 = vcmp.eq.s32.totalorder %v151_v39, 0  ;;  %vm154_vm4 = vcmp.eq.s32.totalorder %v151_v39, 1 }
   0x5   :  { %215 = vmatmul.msk.bf16.vlgmr.msra.gmra.mxu1 %vm97_vm0, %v178_v5  ;;  %v173_v12 = vld [vmem:[%s301_s0] sm:$0xf]  ;;  %v217_v13 = vld [vmem:[%s301_s0 + $0x4] sm:$0xf0] }
   0x6   :  { %102 = vmatpush.bf16.msra.mxu0 %v224_v1  ;;  %v174_v14 = vor.u32 %v217_v13, %v173_v12 }
   0xa   :  { %103 = vmatpush.bf16.msra.mxu0 %v223_v6 }
   0xe   :  { %104 = vmatpush.bf16.msra.mxu0 %v222_v7 }
  0x12   :  { %105 = vmatpush.bf16.msra.mxu0 %v221_v8 }
  0x16   :  { %106 = vmatpush.bf16.msra.mxu0 %v220_v9 }
  0x1a   :  { %107 = vmatpush.bf16.msra.mxu0 %v219_v10 }
  0x1e   :  { %108 = vmatpush.bf16.msra.mxu0 %v218_v11 }
  0x21   :  { %109 = vmatmul.bf16.vlgmr.msra.gmra.mxu0 %v174_v14 }
  0x82   :  { %v124_v15 = vpop.f32.mrf.mxu1 }
  0x8a   :  { %v126_v19 = vpop.f32.mrf.mxu1 }
  0x9e   :  { %v110_v16 = vpop.f32.mrf.mxu0 }
  0x9f   :  { %v125_v17 = vadd.f32 %v124_v15, %v110_v16 }
  0xa1   :  { %v158_v18 = vpack.c.bf16 %v125_v17, %v125_v17  ;;  %v139_v21 = vmul.f32 %v125_v17, %v125_v17  ;;  %v130_v23 = vsel %vm129_vm2, %v125_v17, 0.0 }
  0xa3   :  { %161 = vst.msk [vmem:[%s302_s2] sm:$0xf] %vm160_vm1, %v158_v18  ;;  %v141_v28 = vsel %vm129_vm2, %v139_v21, 0.0 }
  0xa6   :  { %v112_v20 = vpop.f32.mrf.mxu0 }
  0xa7   :  { %v127_v22 = vadd.f32 %v126_v19, %v112_v20 }
  0xa9   :  { %v131_v24 = vsel %vm129_vm2, %v127_v22, 0.0  ;;  %v140_v25 = vmul.f32 %v127_v22, %v127_v22  ;;  %v159_v26 = vpack.c.bf16 %v127_v22, %v127_v22 }
  0xaa   :  { %v132_v27 = vadd.f32 %v131_v24, %v130_v23 }
  0xab   :  { %v142_v29 = vsel %vm129_vm2, %v140_v25, 0.0  ;;  %162 = vst.msk [vmem:[%s302_s2 + $0x4] sm:$0xf] %vm160_vm1, %v159_v26 }
  0xac   :  { %v133_v30 = vrot.slane %v132_v27, 4  ;;  %v143_v31 = vadd.f32 %v142_v29, %v141_v28 }
  0xae   :  { %v134_v32 = vadd.f32 %v133_v30, %v132_v27  ;;  %v144_v33 = vrot.slane %v143_v31, 4 }
  0xb0   :  { %v135_v35 = vrot.slane %v134_v32, 2  ;;  %v145_v36 = vadd.f32 %v144_v33, %v143_v31 }
  0xb2   :  { %v136_v37 = vadd.f32 %v135_v35, %v134_v32  ;;  %v146_v38 = vrot.slane %v145_v36, 2 }
  0xb4   :  { %v137_v40 = vrot.slane %v136_v37, 1  ;;  %v147_v41 = vadd.f32 %v146_v38, %v145_v36 }
  0xb6   :  { %v138_v42 = vadd.f32 %v137_v40, %v136_v37  ;;  %v148_v43 = vrot.slane %v147_v41, 1 }
  0xb8   :  { %v149_v44 = vadd.f32 %v148_v43, %v147_v41  ;;  %v153_v45 = vsel %vm152_vm3, %v138_v42, 0.0 }
  0xba   :  { %v155_v46 = vsel %vm154_vm4, %v149_v44, 0.0 }
  0xbb   :  { %v156_v47 = vadd.f32 %v155_v46, %v153_v45 }
  0xbd   :  { %157 = vst.msk [vmem:[%s303_s3] sm:$0xff] %vm129_vm2, %v156_v47 }

// kernel: vae_encoder_forward.9
= control target key start
LH: loop header
LB: loop body
LE: loop exit
PB: predicated region body
PF: predicated region fallthrough
CT: control target
= control target key end

     0   :  { %vm177_vm0 = vcmask 261120   ;;  %vm253_vm1 = vcmask 257024   ;;  %v243_v50 = vlaneseq  ;;  %s479_s1 = inlined_call_operand.vmem [shape: bf16[288,32], index: 1, kind: input, shape index: {}]   ;;  %s480_s0 = inlined_call_operand.vmem [shape: bf16[16,288], index: 0, kind: input, shape index: {}]   ;;  %s481_s2 = inlined_call_operand.vmem [shape: bf16[16,32], index: 2, kind: output, shape index: {0}]   ;;  %s482_s3 = inlined_call_operand.vmem [shape: f32[8,32], index: 3, kind: output, shape index: {1}]  }
   0x1   :  { %v359_v0 = vld [vmem:[%s479_s1 + $0x38] sm:$0xff]  ;;  %v358_v2 = vld [vmem:[%s479_s1 + $0x30] sm:$0xff]  ;;  %v369_v4 = vld [vmem:[%s479_s1 + $0x88] sm:$0xff] }
   0x2   :  { %v367_v1 = vld [vmem:[%s479_s1 + $0x78] sm:$0xff]  ;;  %181 = vmatpush.bf16.msra.mxu0 %v359_v0  ;;  %v366_v3 = vld [vmem:[%s479_s1 + $0x70] sm:$0xff]  ;;  %215 = vmatpush.bf16.msra.mxu2 %v369_v4  ;;  %v368_v5 = vld [vmem:[%s479_s1 + $0x80] sm:$0xff]  ;;  %v244_v55 = vshrl.u32 %v243_v50, 7 }
   0x3   :  { %195 = vmatpush.bf16.msra.mxu1 %v367_v1  ;;  %v274_v6 = vld [vmem:[%s480_s0 + $0x8] sm:$0xf]  ;;  %v351_v7 = vld [vmem:[%s480_s0 + $0x10] sm:$0xf0]  ;;  %v356_v11 = vld [vmem:[%s479_s1 + $0x20] sm:$0xff] }
   0x4   :  { %v357_v8 = vld [vmem:[%s479_s1 + $0x28] sm:$0xff]  ;;  %v275_v10 = vor.u32 %v351_v7, %v274_v6  ;;  %v364_v12 = vld [vmem:[%s479_s1 + $0x60] sm:$0xff]  ;;  %v355_v13 = vld [vmem:[%s479_s1 + $0x18] sm:$0xff]  ;;  %vm245_vm2 = vcmp.eq.s32.totalorder %v244_v55, 0  ;;  %vm247_vm3 = vcmp.eq.s32.totalorder %v244_v55, 1 }
   0x5   :  { %v365_v9 = vld [vmem:[%s479_s1 + $0x68] sm:$0xff]  ;;  %v363_v14 = vld [vmem:[%s479_s1 + $0x58] sm:$0xff]  ;;  %v354_v15 = vld [vmem:[%s479_s1 + $0x10] sm:$0xff] }
   0x6   :  { %182 = vmatpush.bf16.msra.mxu0 %v358_v2  ;;  %216 = vmatpush.bf16.msra.mxu2 %v368_v5  ;;  %v362_v16 = vld [vmem:[%s479_s1 + $0x50] sm:$0xff]  ;;  %v353_v17 = vld [vmem:[%s479_s1 + $0x8] sm:$0xff]  ;;  %v352_v19 = vld [vmem:[%s479_s1] sm:$0xff] }
   0x7   :  { %196 = vmatpush.bf16.msra.mxu1 %v366_v3  ;;  %v361_v18 = vld [vmem:[%s479_s1 + $0x48] sm:$0xff]  ;;  %v360_v20 = vld [vmem:[%s479_s1 + $0x40] sm:$0xff]  ;;  %v268_v24 = vld [vmem:[%s480_s0 + $0xc] sm:$0xf0] }
   0x8   :  { %v266_v21 = vld [vmem:[%s480_s0] sm:$0xf]  ;;  %v350_v22 = vld [vmem:[%s480_s0 + $0x8] sm:$0xf0]  ;;  %v349_v23 = vld [vmem:[%s480_s0 + $0x4] sm:$0xf] }
   0x9   :  { %348 = vmatmul.msk.bf16.vlgmr.msra.gmra.mxu2 %vm177_vm0, %v275_v10  ;;  %v267_v25 = vor.u32 %v350_v22, %v266_v21  ;;  %v271_v26 = vor.u32 %v349_v23, %v268_v24 }
   0xa   :  { %183 = vmatpush.bf16.msra.mxu0 %v357_v8 }
   0xb   :  { %197 = vmatpush.bf16.msra.mxu1 %v365_v9 }
   0xe   :  { %184 = vmatpush.bf16.msra.mxu0 %v356_v11 }
   0xf   :  { %198 = vmatpush.bf16.msra.mxu1 %v364_v12 }
  0x12   :  { %185 = vmatpush.bf16.msra.mxu0 %v355_v13 }
  0x13   :  { %199 = vmatpush.bf16.msra.mxu1 %v363_v14 }
  0x16   :  { %186 = vmatpush.bf16.msra.mxu0 %v354_v15 }
  0x17   :  { %200 = vmatpush.bf16.msra.mxu1 %v362_v16 }
  0x1a   :  { %187 = vmatpush.bf16.msra.mxu0 %v353_v17 }
  0x1b   :  { %201 = vmatpush.bf16.msra.mxu1 %v361_v18 }
  0x1e   :  { %188 = vmatpush.bf16.msra.mxu0 %v352_v19 }
  0x1f   :  { %202 = vmatpush.bf16.msra.mxu1 %v360_v20 }
  0x21   :  { %189 = vmatmul.bf16.vlgmr.msra.gmra.mxu0 %v267_v25 }
  0x22   :  { %203 = vmatmul.bf16.vlgmr.msra.gmra.mxu1 %v271_v26 }
  0x8c   :  { %v218_v27 = vpop.f32.mrf.mxu2 }
  0x94   :  { %v220_v36 = vpop.f32.mrf.mxu2 }
  0x9e   :  { %v190_v28 = vpop.f32.mrf.mxu0 }
  0x9f   :  { %v204_v29 = vpop.f32.mrf.mxu1 }
  0xa0   :  { %v205_v30 = vadd.f32 %v204_v29, %v190_v28 }
  0xa2   :  { %v219_v31 = vadd.f32 %v218_v27, %v205_v30 }
  0xa4   :  { %v251_v32 = vpack.c.bf16 %v219_v31, %v219_v31  ;;  %v232_v37 = vmul.f32 %v219_v31, %v219_v31  ;;  %v223_v39 = vsel %vm177_vm0, %v219_v31, 0.0 }
  0xa6   :  { %254 = vst.msk [vmem:[%s481_s2] sm:$0xf] %vm253_vm1, %v251_v32  ;;  %v192_v33 = vpop.f32.mrf.mxu0  ;;  %v234_v44 = vsel %vm177_vm0, %v232_v37, 0.0 }
  0xa7   :  { %v206_v34 = vpop.f32.mrf.mxu1 }
  0xa8   :  { %v207_v35 = vadd.f32 %v206_v34, %v192_v33 }
  0xaa   :  { %v221_v38 = vadd.f32 %v220_v36, %v207_v35 }
  0xac   :  { %v224_v40 = vsel %vm177_vm0, %v221_v38, 0.0  ;;  %v233_v41 = vmul.f32 %v221_v38, %v221_v38  ;;  %v252_v42 = vpack.c.bf16 %v221_v38, %v221_v38 }
  0xad   :  { %v225_v43 = vadd.f32 %v224_v40, %v223_v39 }
  0xae   :  { %v235_v45 = vsel %vm177_vm0, %v233_v41, 0.0  ;;  %255 = vst.msk [vmem:[%s481_s2 + $0x4] sm:$0xf] %vm253_vm1, %v252_v42 }
  0xaf   :  { %v226_v46 = vrot.slane %v225_v43, 4  ;;  %v236_v47 = vadd.f32 %v235_v45, %v234_v44 }
  0xb1   :  { %v227_v48 = vadd.f32 %v226_v46, %v225_v43  ;;  %v237_v49 = vrot.slane %v236_v47, 4 }
  0xb3   :  { %v228_v51 = vrot.slane %v227_v48, 2  ;;  %v238_v52 = vadd.f32 %v237_v49, %v236_v47 }
  0xb5   :  { %v229_v53 = vadd.f32 %v228_v51, %v227_v48  ;;  %v239_v54 = vrot.slane %v238_v52, 2 }
  0xb7   :  { %v230_v56 = vrot.slane %v229_v53, 1  ;;  %v240_v57 = vadd.f32 %v239_v54, %v238_v52 }
  0xb9   :  { %v231_v58 = vadd.f32 %v230_v56, %v229_v53  ;;  %v241_v59 = vrot.slane %v240_v57, 1 }
  0xbb   :  { %v242_v60 = vadd.f32 %v241_v59, %v240_v57  ;;  %v246_v61 = vsel %vm245_vm2, %v231_v58, 0.0 }
  0xbd   :  { %v248_v62 = vsel %vm247_vm3, %v242_v60, 0.0 }
  0xbe   :  { %v249_v63 = vadd.f32 %v248_v62, %v246_v61 }
  0xc0   :  { %250 = vst.msk [vmem:[%s482_s3] sm:$0xff] %vm177_vm0, %v249_v63 }

// kernel: vae_encoder_forward.10
= control target key start
LH: loop header
LB: loop body
LE: loop exit
PB: predicated region body
PF: predicated region fallthrough
CT: control target
= control target key end

     0   :  { %vm177_vm0 = vcmask 261120   ;;  %vm254_vm1 = vcmask 125952   ;;  %vm223_vm2 = vcmask 130048   ;;  %v244_v50 = vlaneseq  ;;  %s479_s1 = inlined_call_operand.vmem [shape: bf16[288,16], index: 1, kind: input, shape index: {}]   ;;  %s480_s0 = inlined_call_operand.vmem [shape: bf16[16,288], index: 0, kind: input, shape index: {}]   ;;  %s481_s2 = inlined_call_operand.vmem [shape: bf16[16,16], index: 2, kind: output, shape index: {0}]   ;;  %s482_s3 = inlined_call_operand.vmem [shape: f32[8,16], index: 3, kind: output, shape index: {1}]  }
   0x1   :  { %v360_v0 = vld [vmem:[%s479_s1 + $0x38] sm:$0xff]  ;;  %v359_v2 = vld [vmem:[%s479_s1 + $0x30] sm:$0xff]  ;;  %v370_v4 = vld [vmem:[%s479_s1 + $0x88] sm:$0xff] }
   0x2   :  { %v368_v1 = vld [vmem:[%s479_s1 + $0x78] sm:$0xff]  ;;  %181 = vmatpush.bf16.msra.mxu0 %v360_v0  ;;  %v367_v3 = vld [vmem:[%s479_s1 + $0x70] sm:$0xff]  ;;  %215 = vmatpush.bf16.msra.mxu2 %v370_v4  ;;  %v369_v5 = vld [vmem:[%s479_s1 + $0x80] sm:$0xff]  ;;  %v245_v55 = vshrl.u32 %v244_v50, 7 }
   0x3   :  { %195 = vmatpush.bf16.msra.mxu1 %v368_v1  ;;  %v275_v6 = vld [vmem:[%s480_s0 + $0x8] sm:$0xf]  ;;  %v352_v7 = vld [vmem:[%s480_s0 + $0x10] sm:$0xf0]  ;;  %v357_v11 = vld [vmem:[%s479_s1 + $0x20] sm:$0xff] }
   0x4   :  { %v358_v8 = vld [vmem:[%s479_s1 + $0x28] sm:$0xff]  ;;  %v276_v10 = vor.u32 %v352_v7, %v275_v6  ;;  %v365_v12 = vld [vmem:[%s479_s1 + $0x60] sm:$0xff]  ;;  %v356_v13 = vld [vmem:[%s479_s1 + $0x18] sm:$0xff]  ;;  %vm246_vm3 = vcmp.eq.s32.totalorder %v245_v55, 0  ;;  %vm248_vm4 = vcmp.eq.s32.totalorder %v245_v55, 1 }
   0x5   :  { %v366_v9 = vld [vmem:[%s479_s1 + $0x68] sm:$0xff]  ;;  %v364_v14 = vld [vmem:[%s479_s1 + $0x58] sm:$0xff]  ;;  %v355_v15 = vld [vmem:[%s479_s1 + $0x10] sm:$0xff] }
   0x6   :  { %182 = vmatpush.bf16.msra.mxu0 %v359_v2  ;;  %216 = vmatpush.bf16.msra.mxu2 %v369_v5  ;;  %v363_v16 = vld [vmem:[%s479_s1 + $0x50] sm:$0xff]  ;;  %v354_v17 = vld [vmem:[%s479_s1 + $0x8] sm:$0xff]  ;;  %v353_v19 = vld [vmem:[%s479_s1] sm:$0xff] }
   0x7   :  { %196 = vmatpush.bf16.msra.mxu1 %v367_v3  ;;  %v362_v18 = vld [vmem:[%s479_s1 + $0x48] sm:$0xff]  ;;  %v361_v20 = vld [vmem:[%s479_s1 + $0x40] sm:$0xff]  ;;  %v269_v24 = vld [vmem:[%s480_s0 + $0xc] sm:$0xf0] }
   0x8   :  { %v267_v21 = vld [vmem:[%s480_s0] sm:$0xf]  ;;  %v351_v22 = vld [vmem:[%s480_s0 + $0x8] sm:$0xf0]  ;;  %v350_v23 = vld [vmem:[%s480_s0 + $0x4] sm:$0xf] }
   0x9   :  { %349 = vmatmul.msk.bf16.vlgmr.msra.gmra.mxu2 %vm177_vm0, %v276_v10  ;;  %v268_v25 = vor.u32 %v351_v22, %v267_v21  ;;  %v272_v26 = vor.u32 %v350_v23, %v269_v24 }
   0xa   :  { %183 = vmatpush.bf16.msra.mxu0 %v358_v8 }
   0xb   :  { %197 = vmatpush.bf16.msra.mxu1 %v366_v9 }
   0xe   :  { %184 = vmatpush.bf16.msra.mxu0 %v357_v11 }
   0xf   :  { %198 = vmatpush.bf16.msra.mxu1 %v365_v12 }
  0x12   :  { %185 = vmatpush.bf16.msra.mxu0 %v356_v13 }
  0x13   :  { %199 = vmatpush.bf16.msra.mxu1 %v364_v14 }
  0x16   :  { %186 = vmatpush.bf16.msra.mxu0 %v355_v15 }
  0x17   :  { %200 = vmatpush.bf16.msra.mxu1 %v363_v16 }
  0x1a   :  { %187 = vmatpush.bf16.msra.mxu0 %v354_v17 }
  0x1b   :  { %201 = vmatpush.bf16.msra.mxu1 %v362_v18 }
  0x1e   :  { %188 = vmatpush.bf16.msra.mxu0 %v353_v19 }
  0x1f   :  { %202 = vmatpush.bf16.msra.mxu1 %v361_v20 }
  0x21   :  { %189 = vmatmul.bf16.vlgmr.msra.gmra.mxu0 %v268_v25 }
  0x22   :  { %203 = vmatmul.bf16.vlgmr.msra.gmra.mxu1 %v272_v26 }
  0x8c   :  { %v218_v27 = vpop.f32.mrf.mxu2 }
  0x94   :  { %v220_v36 = vpop.f32.mrf.mxu2 }
  0x9e   :  { %v190_v28 = vpop.f32.mrf.mxu0 }
  0x9f   :  { %v204_v29 = vpop.f32.mrf.mxu1 }
  0xa0   :  { %v205_v30 = vadd.f32 %v204_v29, %v190_v28 }
  0xa2   :  { %v219_v31 = vadd.f32 %v218_v27, %v205_v30 }
  0xa4   :  { %v252_v32 = vpack.c.bf16 %v219_v31, %v219_v31  ;;  %v233_v37 = vmul.f32 %v219_v31, %v219_v31  ;;  %v224_v39 = vsel %vm223_vm2, %v219_v31, 0.0 }
  0xa6   :  { %255 = vst.msk [vmem:[%s481_s2] sm:$0xf] %vm254_vm1, %v252_v32  ;;  %v192_v33 = vpop.f32.mrf.mxu0  ;;  %v235_v44 = vsel %vm223_vm2, %v233_v37, 0.0 }
  0xa7   :  { %v206_v34 = vpop.f32.mrf.mxu1 }
  0xa8   :  { %v207_v35 = vadd.f32 %v206_v34, %v192_v33 }
  0xaa   :  { %v221_v38 = vadd.f32 %v220_v36, %v207_v35 }
  0xac   :  { %v225_v40 = vsel %vm223_vm2, %v221_v38, 0.0  ;;  %v234_v41 = vmul.f32 %v221_v38, %v221_v38  ;;  %v253_v42 = vpack.c.bf16 %v221_v38, %v221_v38 }
  0xad   :  { %v226_v43 = vadd.f32 %v225_v40, %v224_v39 }
  0xae   :  { %v236_v45 = vsel %vm223_vm2, %v234_v41, 0.0  ;;  %256 = vst.msk [vmem:[%s481_s2 + $0x4] sm:$0xf] %vm254_vm1, %v253_v42 }
  0xaf   :  { %v227_v46 = vrot.slane %v226_v43, 4  ;;  %v237_v47 = vadd.f32 %v236_v45, %v235_v44 }
  0xb1   :  { %v228_v48 = vadd.f32 %v227_v46, %v226_v43  ;;  %v238_v49 = vrot.slane %v237_v47, 4 }
  0xb3   :  { %v229_v51 = vrot.slane %v228_v48, 2  ;;  %v239_v52 = vadd.f32 %v238_v49, %v237_v47 }
  0xb5   :  { %v230_v53 = vadd.f32 %v229_v51, %v228_v48  ;;  %v240_v54 = vrot.slane %v239_v52, 2 }
  0xb7   :  { %v231_v56 = vrot.slane %v230_v53, 1  ;;  %v241_v57 = vadd.f32 %v240_v54, %v239_v52 }
  0xb9   :  { %v232_v58 = vadd.f32 %v231_v56, %v230_v53  ;;  %v242_v59 = vrot.slane %v241_v57, 1 }
  0xbb   :  { %v243_v60 = vadd.f32 %v242_v59, %v241_v57  ;;  %v247_v61 = vsel %vm246_vm3, %v232_v58, 0.0 }
  0xbd   :  { %v249_v62 = vsel %vm248_vm4, %v243_v60, 0.0 }
  0xbe   :  { %v250_v63 = vadd.f32 %v249_v62, %v247_v61 }
  0xc0   :  { %251 = vst.msk [vmem:[%s482_s3] sm:$0xff] %vm223_vm2, %v250_v63 }

// kernel: vae_encoder_forward.11
= control target key start
LH: loop header
LB: loop body
LE: loop exit
PB: predicated region body
PF: predicated region fallthrough
CT: control target
= control target key end

     0   :  { %vm32_vm0 = vcmask 130048   ;;  %s80_s0 = inlined_call_operand.vmem [shape: bf16[16,16], index: 0, kind: input, shape index: {}]   ;;  %s81_s1 = inlined_call_operand.vmem [shape: f32[1,16], index: 1, kind: input, shape index: {}]   ;;  %s82_s2 = inlined_call_operand.vmem [shape: f32[1,16], index: 2, kind: input, shape index: {}]   ;;  %s83_s3 = inlined_call_operand.vmem [shape: f32[16,16], index: 3, kind: output, shape index: {}]  }
   0x1   :  { %v40_v0 = vld [vmem:[%s80_s0] sm:$0xff]  }
   0x2   :  { %v43_v1 = vld [vmem:[%s81_s1] ss:$0 sm:$0xff]  ;;  %v41_v2 = vunpack.c.l.bf16 %v40_v0  ;;  %v42_v4 = vunpack.c.h.bf16 %v40_v0 }
   0x3   :  { %v44_v3 = vld [vmem:[%s82_s2] ss:$0 sm:$0xff] }
   0x4   :  { %v22_v5 = vmul.f32 %v43_v1, %v41_v2  ;;  %v23_v6 = vmul.f32 %v43_v1, %v42_v4 }
   0x6   :  { %v28_v7 = vadd.f32 %v44_v3, %v22_v5  ;;  %v29_v8 = vadd.f32 %v44_v3, %v23_v6 }
   0x8   :  { %v30_v9 = vmax.f32 %v28_v7, 0.0  ;;  %v31_v10 = vmax.f32 %v29_v8, 0.0 }
   0xa   :  { %33 = vst.msk [vmem:[%s83_s3] sm:$0xff] %vm32_vm0, %v30_v9 }
   0xb   :  { %34 = vst.msk [vmem:[%s83_s3 + $0x8] sm:$0xff] %vm32_vm0, %v31_v10 }

</bundles_post_ra>
